<compile_context>
chip_gen: v6e
topology: v6e:2x2x1
jax: 0.10.0
libtpu: 0.0.40
codegen_flags: <defaults>
</compile_context>

<pallas_src>
import functools

import jax
import jax.numpy as jnp
from jax.experimental import pallas as pl
from jax.experimental.pallas import tpu as pltpu


_GELU_C = 0.7978845608028654  # sqrt(2/pi)


def _gelu_tanh(x):
    # tanh-approximate GELU: tanh runs on the EUP (separate VLIW slot), freeing the
    # VALU for the matmul-adjacent work. ~1e-3 deviation from nn.GELU()'s exact erf.
    return 0.5 * x * (1.0 + jnp.tanh(_GELU_C * (x + 0.044715 * (x * x * x))))


def _round_up(n, m):
    return ((n + m - 1) // m) * m


def _pad_cast(a, shape, dtype):
    if tuple(a.shape) != tuple(shape):
        a = jnp.pad(a, [(0, shape[i] - a.shape[i]) for i in range(a.ndim)])
    return a.astype(dtype)


def _make_kernel(h_chunk, n_chunks):
    def kernel(x_ref,
               w1_ref, b1_ref,   # MLPBlock lin1: (Dp, Hp) bf16, (1, Hp) f32
               w2_ref, b2_ref,   # MLPBlock lin2: (Hp, Dp) bf16, (1, Dp) f32
               wd_ref, bd_ref,   # Adapter down:  (Dp, Ap) bf16, (1, Ap) f32
               wu_ref, bu_ref,   # Adapter up:    (Ap, Dp) bf16, (1, Dp) f32
               o_ref):
        tile_m = x_ref.shape[0]
        dp = w2_ref.shape[1]

        # x arrives f32; cast to bf16 in-kernel (saves a host-side HBM pass).
        x = x_ref[...].astype(jnp.bfloat16)                      # (tile_m, Dp)

        # MLPBlock: lin2(gelu(lin1(x))) chunked over the hidden dim so the
        # (tile_m, Hp) activation never fully materializes.
        y = jnp.zeros((tile_m, dp), jnp.float32)
        for c in range(n_chunks):
            lo = c * h_chunk
            h = jnp.dot(x, w1_ref[:, lo:lo + h_chunk],
                        preferred_element_type=jnp.float32)
            h = _gelu_tanh(h + b1_ref[:, lo:lo + h_chunk])
            y = y + jnp.dot(h.astype(jnp.bfloat16), w2_ref[lo:lo + h_chunk, :],
                            preferred_element_type=jnp.float32)
        y = y + b2_ref[...]

        # Adapter: up(gelu(down(y))) + y  -- residual add stays f32.
        a = jnp.dot(y.astype(jnp.bfloat16), wd_ref[...],
                    preferred_element_type=jnp.float32) + bd_ref[...]
        a = _gelu_tanh(a)
        out = jnp.dot(a.astype(jnp.bfloat16), wu_ref[...],
                      preferred_element_type=jnp.float32) + bu_ref[...] + y

        o_ref[...] = out.astype(o_ref.dtype)

    return kernel


def prepare_params(params):
    """One-time prep (hoisted out of the per-call path): zero-pad every lane dim
    to a multiple of 128 and cast weights to bf16. Zero padding keeps the math
    exact (gelu(0) == 0; padded output columns are sliced off by the caller)."""
    w1, b1 = params["w1"], params["b1"]
    w2, b2 = params["w2"], params["b2"]
    wd, bd = params["wd"], params["bd"]
    wu, bu = params["wu"], params["bu"]
    D, H = w1.shape
    A = wd.shape[1]
    Dp, Hp, Ap = _round_up(D, 128), _round_up(H, 128), _round_up(A, 128)
    return {
        "D": D, "H": H, "A": A, "Dp": Dp, "Hp": Hp, "Ap": Ap,
        "w1": _pad_cast(w1, (Dp, Hp), jnp.bfloat16),
        "b1": _pad_cast(b1, (1, Hp), jnp.float32),
        "w2": _pad_cast(w2, (Hp, Dp), jnp.bfloat16),
        "b2": _pad_cast(b2, (1, Dp), jnp.float32),
        "wd": _pad_cast(wd, (Dp, Ap), jnp.bfloat16),
        "bd": _pad_cast(bd, (1, Ap), jnp.float32),
        "wu": _pad_cast(wu, (Ap, Dp), jnp.bfloat16),
        "bu": _pad_cast(bu, (1, Dp), jnp.float32),
    }


def adapter_mlp_block(x, prep, *, tile_m=256, out_dtype=None):
    """x: (B, N, D). prep: output of prepare_params. out_dtype defaults to x.dtype
    (pass jnp.bfloat16 to halve HBM writeback if downstream allows)."""
    B, N, D = x.shape
    assert D == prep["D"], (D, prep["D"])
    M = B * N
    Dp, Hp, Ap = prep["Dp"], prep["Hp"], prep["Ap"]
    out_dtype = x.dtype if out_dtype is None else out_dtype

    # Row tiling: large tiles for MXU utilization, clamped to a multiple of 16 so
    # bf16 blocks never drop below the (16, 128) minimum tile; rows are padded
    # instead of asserting divisibility.
    tile_m = max(16, min(tile_m, _round_up(M, 16)))
    Mp = _round_up(M, tile_m)

    x2 = x.reshape(M, D)
    if (Mp, Dp) != (M, D):
        x2 = jnp.pad(x2, ((0, Mp - M), (0, Dp - D)))

    # Hidden-dim chunking for lin1 -> gelu -> lin2 (<= 512 lanes per chunk).
    if Hp <= 512:
        h_chunk = Hp
    elif Hp % 512 == 0:
        h_chunk = 512
    elif Hp % 256 == 0:
        h_chunk = 256
    else:
        h_chunk = 128
    n_chunks = Hp // h_chunk

    grid = (Mp // tile_m,)

    # Weights/biases: constant block index + single-buffered (Buffered(1)) -> DMA'd
    # once, resident across the whole row grid, no wasted double-buffer copy.
    def const_spec(shape):
        return pl.BlockSpec(shape, lambda i: (0, 0), pipeline_mode=pl.Buffered(1))

    x_bytes = jnp.dtype(x2.dtype).itemsize
    o_bytes = jnp.dtype(out_dtype).itemsize

    # Honest, generation-aware VMEM budget:
    #   bf16 weights x1 (single-buffered) + f32 biases + double-buffered x/out row
    #   tiles + f32/bf16 intermediates, ~30% headroom, capped at 80% of physical VMEM.
    weight_bytes = 2 * (Dp * Hp + Hp * Dp + Dp * Ap + Ap * Dp)
    bias_bytes = 4 * (Hp + 2 * Dp + Ap)
    io_bytes = 2 * tile_m * Dp * (x_bytes + o_bytes)
    interm_bytes = tile_m * (4 * (Dp + h_chunk + Ap + Dp) + 2 * (Dp + h_chunk + Ap))
    need = weight_bytes + bias_bytes + io_bytes + interm_bytes
    try:
        vmem_cap = int(pltpu.get_tpu_info().vmem_capacity_bytes)
    except Exception:
        vmem_cap = 64 * 1024 * 1024
    vmem_limit = int(min(int(0.8 * vmem_cap),
                         max(16 * 1024 * 1024, int(1.3 * need))))

    cost = pl.CostEstimate(
        flops=4 * Mp * (Dp * Hp + Dp * Ap),
        transcendentals=Mp * (Hp + Ap),
        bytes_accessed=int(x_bytes * Mp * Dp + weight_bytes + bias_bytes
                           + o_bytes * Mp * Dp),
    )

    kernel = _make_kernel(h_chunk, n_chunks)

    out2 = pl.pallas_call(
        kernel,
        out_shape=jax.ShapeDtypeStruct((Mp, Dp), out_dtype),
        grid_spec=pltpu.PrefetchScalarGridSpec(
            num_scalar_prefetch=0,
            grid=grid,
            in_specs=[
                pl.BlockSpec((tile_m, Dp), lambda i: (i, 0)),   # x row tile (f32)
                const_spec((Dp, Hp)), const_spec((1, Hp)),
                const_spec((Hp, Dp)), const_spec((1, Dp)),
                const_spec((Dp, Ap)), const_spec((1, Ap)),
                const_spec((Ap, Dp)), const_spec((1, Dp)),
            ],
            out_specs=pl.BlockSpec((tile_m, Dp), lambda i: (i, 0)),
        ),
        compiler_params=pltpu.CompilerParams(
            dimension_semantics=("parallel",),   # row grid shards across TCs (v7x)
            vmem_limit_bytes=vmem_limit,
        ),
        cost_estimate=cost,
    )(x2, prep["w1"], prep["b1"], prep["w2"], prep["b2"],
      prep["wd"], prep["bd"], prep["wu"], prep["bu"])

    return out2[:M, :D].reshape(B, N, D)


def init_params(key, D, H, A, init_scale=0.001):
    """Synthetic init matching the module: torch-default Linear init for the MLP,
    uniform(-init_scale, init_scale) weights / zero biases for the adapter."""
    k1, k2, k3, k4, k5, k6 = jax.random.split(key, 6)
    lim1 = 1.0 / jnp.sqrt(D)
    lim2 = 1.0 / jnp.sqrt(H)
    return {
        "w1": jax.random.uniform(k1, (D, H), jnp.float32, -lim1, lim1),
        "b1": jax.random.uniform(k2, (1, H), jnp.float32, -lim1, lim1),
        "w2": jax.random.uniform(k3, (H, D), jnp.float32, -lim2, lim2),
        "b2": jax.random.uniform(k4, (1, D), jnp.float32, -lim2, lim2),
        "wd": jax.random.uniform(k5, (D, A), jnp.float32, -init_scale, init_scale),
        "bd": jnp.zeros((1, A), jnp.float32),
        "wu": jax.random.uniform(k6, (A, D), jnp.float32, -init_scale, init_scale),
        "bu": jnp.zeros((1, D), jnp.float32),
    }


def reference(x, p):
    # Full-f32 reference with nn.GELU()'s exact erf. The kernel uses bf16 MXU
    # operands and tanh-approximate GELU, so allow ~1e-2-level deviation.
    x2 = x.reshape(-1, x.shape[-1])
    g = lambda v: 0.5 * v * (1.0 + jax.lax.erf(v / jnp.sqrt(2.0)))
    y = g(x2 @ p["w1"] + p["b1"]) @ p["w2"] + p["b2"]
    out = g(y @ p["wd"] + p["bd"]) @ p["wu"] + p["bu"] + y
    return out.reshape(x.shape)


if __name__ == "__main__":
    B, N, D = 2, 8, 32          # batch, tokens, embedding_dim
    H, A = 64, 16               # mlp_dim, adapter_dim

    key = jax.random.PRNGKey(0)
    kx, kp = jax.random.split(key)
    x = jax.random.normal(kx, (B, N, D), jnp.float32)
    params = init_params(kp, D, H, A)

    prep = prepare_params(params)           # pad + bf16 cast, once
    out = adapter_mlp_block(x, prep)
    out = jax.block_until_ready(out)

    ref = reference(x, params)
    assert out.shape == (B, N, D)
    assert jnp.allclose(out, ref, atol=5e-2, rtol=5e-2), (
        "mismatch vs reference, max abs err = %g" % float(jnp.max(jnp.abs(out - ref))))

    print("KERNEL_OK")
</pallas_src>

<mosaic_0001>
module attributes {stable_mosaic.version = 11 : i64} {
  func.func @kernel(%arg0: i32, %arg1: memref<16x128xf32, #tpu.memory_space<vmem>>, %arg2: memref<128x128xbf16, #tpu.memory_space<vmem>>, %arg3: memref<1x128xf32, #tpu.memory_space<vmem>>, %arg4: memref<128x128xbf16, #tpu.memory_space<vmem>>, %arg5: memref<1x128xf32, #tpu.memory_space<vmem>>, %arg6: memref<128x128xbf16, #tpu.memory_space<vmem>>, %arg7: memref<1x128xf32, #tpu.memory_space<vmem>>, %arg8: memref<128x128xbf16, #tpu.memory_space<vmem>>, %arg9: memref<1x128xf32, #tpu.memory_space<vmem>>, %arg10: memref<16x128xf32, #tpu.memory_space<vmem>>) attributes {dimension_semantics = [#tpu.dimension_semantics<parallel>], iteration_bounds = array<i64: 1>, scalar_prefetch = 0 : i64, scratch_operands = 0 : i64, tpu.core_type = #tpu.core_type<tc>, window_params = [{transform_indices = @transform_0, window_bounds = array<i64: 16, 128>}, {pipeline_mode = #tpu.pipeline_mode<synchronous>, transform_indices = @transform_1, window_bounds = array<i64: 128, 128>}, {pipeline_mode = #tpu.pipeline_mode<synchronous>, transform_indices = @transform_2, window_bounds = array<i64: 1, 128>}, {pipeline_mode = #tpu.pipeline_mode<synchronous>, transform_indices = @transform_3, window_bounds = array<i64: 128, 128>}, {pipeline_mode = #tpu.pipeline_mode<synchronous>, transform_indices = @transform_4, window_bounds = array<i64: 1, 128>}, {pipeline_mode = #tpu.pipeline_mode<synchronous>, transform_indices = @transform_5, window_bounds = array<i64: 128, 128>}, {pipeline_mode = #tpu.pipeline_mode<synchronous>, transform_indices = @transform_6, window_bounds = array<i64: 1, 128>}, {pipeline_mode = #tpu.pipeline_mode<synchronous>, transform_indices = @transform_7, window_bounds = array<i64: 128, 128>}, {pipeline_mode = #tpu.pipeline_mode<synchronous>, transform_indices = @transform_8, window_bounds = array<i64: 1, 128>}, {transform_indices = @transform_9, window_bounds = array<i64: 16, 128>}]} {
    %c0 = arith.constant 0 : index
    %c0_0 = arith.constant 0 : index
    %0 = vector.load %arg1[%c0, %c0_0] : memref<16x128xf32, #tpu.memory_space<vmem>>, vector<16x128xf32>
    %1 = arith.truncf %0 : vector<16x128xf32> to vector<16x128xbf16>
    %cst = arith.constant 0.000000e+00 : f32
    %2 = vector.broadcast %cst : f32 to vector<16x128xf32>
    %c0_1 = arith.constant 0 : index
    %c0_2 = arith.constant 0 : index
    %3 = vector.load %arg2[%c0_1, %c0_2] : memref<128x128xbf16, #tpu.memory_space<vmem>>, vector<128x128xbf16>
    %cst_3 = arith.constant dense<0.000000e+00> : vector<16x128xf32>
    %4 = tpu.matmul %1, %3, %cst_3 {dimension_numbers = #tpu.dot_dimension_numbers<[1], [0], [0], [1], [0, 0, 1, 1], [], []>} : vector<16x128xbf16>, vector<128x128xbf16>, vector<16x128xf32> -> vector<16x128xf32>
    %c0_4 = arith.constant 0 : index
    %c0_5 = arith.constant 0 : index
    %5 = vector.load %arg3[%c0_4, %c0_5] : memref<1x128xf32, #tpu.memory_space<vmem>>, vector<1x128xf32>
    %6 = vector.broadcast %5 : vector<1x128xf32> to vector<16x128xf32>
    %7 = arith.addf %4, %6 : vector<16x128xf32>
    %cst_6 = arith.constant 5.000000e-01 : f32
    %8 = vector.broadcast %cst_6 : f32 to vector<16x128xf32>
    %9 = arith.mulf %8, %7 : vector<16x128xf32>
    %10 = arith.mulf %7, %7 : vector<16x128xf32>
    %11 = arith.mulf %10, %7 : vector<16x128xf32>
    %cst_7 = arith.constant 4.471500e-02 : f32
    %12 = vector.broadcast %cst_7 : f32 to vector<16x128xf32>
    %13 = arith.mulf %12, %11 : vector<16x128xf32>
    %14 = arith.addf %7, %13 : vector<16x128xf32>
    %cst_8 = arith.constant 0.797884583 : f32
    %15 = vector.broadcast %cst_8 : f32 to vector<16x128xf32>
    %16 = arith.mulf %15, %14 : vector<16x128xf32>
    %17 = math.tanh %16 : vector<16x128xf32>
    %cst_9 = arith.constant 1.000000e+00 : f32
    %18 = vector.broadcast %cst_9 : f32 to vector<16x128xf32>
    %19 = arith.addf %18, %17 : vector<16x128xf32>
    %20 = arith.mulf %9, %19 : vector<16x128xf32>
    %21 = arith.truncf %20 : vector<16x128xf32> to vector<16x128xbf16>
    %c0_10 = arith.constant 0 : index
    %c0_11 = arith.constant 0 : index
    %22 = vector.load %arg4[%c0_10, %c0_11] : memref<128x128xbf16, #tpu.memory_space<vmem>>, vector<128x128xbf16>
    %cst_12 = arith.constant dense<0.000000e+00> : vector<16x128xf32>
    %23 = tpu.matmul %21, %22, %cst_12 {dimension_numbers = #tpu.dot_dimension_numbers<[1], [0], [0], [1], [0, 0, 1, 1], [], []>} : vector<16x128xbf16>, vector<128x128xbf16>, vector<16x128xf32> -> vector<16x128xf32>
    %24 = arith.addf %2, %23 : vector<16x128xf32>
    %c0_13 = arith.constant 0 : index
    %c0_14 = arith.constant 0 : index
    %25 = vector.load %arg5[%c0_13, %c0_14] : memref<1x128xf32, #tpu.memory_space<vmem>>, vector<1x128xf32>
    %26 = vector.broadcast %25 : vector<1x128xf32> to vector<16x128xf32>
    %27 = arith.addf %24, %26 : vector<16x128xf32>
    %28 = arith.truncf %27 : vector<16x128xf32> to vector<16x128xbf16>
    %c0_15 = arith.constant 0 : index
    %c0_16 = arith.constant 0 : index
    %29 = vector.load %arg6[%c0_15, %c0_16] : memref<128x128xbf16, #tpu.memory_space<vmem>>, vector<128x128xbf16>
    %cst_17 = arith.constant dense<0.000000e+00> : vector<16x128xf32>
    %30 = tpu.matmul %28, %29, %cst_17 {dimension_numbers = #tpu.dot_dimension_numbers<[1], [0], [0], [1], [0, 0, 1, 1], [], []>} : vector<16x128xbf16>, vector<128x128xbf16>, vector<16x128xf32> -> vector<16x128xf32>
    %c0_18 = arith.constant 0 : index
    %c0_19 = arith.constant 0 : index
    %31 = vector.load %arg7[%c0_18, %c0_19] : memref<1x128xf32, #tpu.memory_space<vmem>>, vector<1x128xf32>
    %32 = vector.broadcast %31 : vector<1x128xf32> to vector<16x128xf32>
    %33 = arith.addf %30, %32 : vector<16x128xf32>
    %cst_20 = arith.constant 5.000000e-01 : f32
    %34 = vector.broadcast %cst_20 : f32 to vector<16x128xf32>
    %35 = arith.mulf %34, %33 : vector<16x128xf32>
    %36 = arith.mulf %33, %33 : vector<16x128xf32>
    %37 = arith.mulf %36, %33 : vector<16x128xf32>
    %cst_21 = arith.constant 4.471500e-02 : f32
    %38 = vector.broadcast %cst_21 : f32 to vector<16x128xf32>
    %39 = arith.mulf %38, %37 : vector<16x128xf32>
    %40 = arith.addf %33, %39 : vector<16x128xf32>
    %cst_22 = arith.constant 0.797884583 : f32
    %41 = vector.broadcast %cst_22 : f32 to vector<16x128xf32>
    %42 = arith.mulf %41, %40 : vector<16x128xf32>
    %43 = math.tanh %42 : vector<16x128xf32>
    %cst_23 = arith.constant 1.000000e+00 : f32
    %44 = vector.broadcast %cst_23 : f32 to vector<16x128xf32>
    %45 = arith.addf %44, %43 : vector<16x128xf32>
    %46 = arith.mulf %35, %45 : vector<16x128xf32>
    %47 = arith.truncf %46 : vector<16x128xf32> to vector<16x128xbf16>
    %c0_24 = arith.constant 0 : index
    %c0_25 = arith.constant 0 : index
    %48 = vector.load %arg8[%c0_24, %c0_25] : memref<128x128xbf16, #tpu.memory_space<vmem>>, vector<128x128xbf16>
    %cst_26 = arith.constant dense<0.000000e+00> : vector<16x128xf32>
    %49 = tpu.matmul %47, %48, %cst_26 {dimension_numbers = #tpu.dot_dimension_numbers<[1], [0], [0], [1], [0, 0, 1, 1], [], []>} : vector<16x128xbf16>, vector<128x128xbf16>, vector<16x128xf32> -> vector<16x128xf32>
    %c0_27 = arith.constant 0 : index
    %c0_28 = arith.constant 0 : index
    %50 = vector.load %arg9[%c0_27, %c0_28] : memref<1x128xf32, #tpu.memory_space<vmem>>, vector<1x128xf32>
    %51 = vector.broadcast %50 : vector<1x128xf32> to vector<16x128xf32>
    %52 = arith.addf %49, %51 : vector<16x128xf32>
    %53 = arith.addf %52, %27 : vector<16x128xf32>
    %c0_29 = arith.constant 0 : index
    %c0_30 = arith.constant 0 : index
    %54 = vector.load %arg10[%c0_29, %c0_30] : memref<16x128xf32, #tpu.memory_space<vmem>>, vector<16x128xf32>
    tpu.vector_store %arg10[%c0_29, %c0_30], %53 {strides = array<i32>} : memref<16x128xf32, #tpu.memory_space<vmem>>, vector<16x128xf32>,
    return
  }
  func.func @transform_0(%arg0: i32) -> (i32, i32) {
    %c0_i32 = arith.constant 0 : i32
    %c0_i32_0 = arith.constant 0 : i32
    return %arg0, %c0_i32 : i32, i32
  }
  func.func @transform_1(%arg0: i32) -> (i32, i32) {
    %c0_i32 = arith.constant 0 : i32
    %c0_i32_0 = arith.constant 0 : i32
    %c0_i32_1 = arith.constant 0 : i32
    return %c0_i32, %c0_i32_0 : i32, i32
  }
  func.func @transform_2(%arg0: i32) -> (i32, i32) {
    %c0_i32 = arith.constant 0 : i32
    %c0_i32_0 = arith.constant 0 : i32
    %c0_i32_1 = arith.constant 0 : i32
    return %c0_i32, %c0_i32_0 : i32, i32
  }
  func.func @transform_3(%arg0: i32) -> (i32, i32) {
    %c0_i32 = arith.constant 0 : i32
    %c0_i32_0 = arith.constant 0 : i32
    %c0_i32_1 = arith.constant 0 : i32
    return %c0_i32, %c0_i32_0 : i32, i32
  }
  func.func @transform_4(%arg0: i32) -> (i32, i32) {
    %c0_i32 = arith.constant 0 : i32
    %c0_i32_0 = arith.constant 0 : i32
    %c0_i32_1 = arith.constant 0 : i32
    return %c0_i32, %c0_i32_0 : i32, i32
  }
  func.func @transform_5(%arg0: i32) -> (i32, i32) {
    %c0_i32 = arith.constant 0 : i32
    %c0_i32_0 = arith.constant 0 : i32
    %c0_i32_1 = arith.constant 0 : i32
    return %c0_i32, %c0_i32_0 : i32, i32
  }
  func.func @transform_6(%arg0: i32) -> (i32, i32) {
    %c0_i32 = arith.constant 0 : i32
    %c0_i32_0 = arith.constant 0 : i32
    %c0_i32_1 = arith.constant 0 : i32
    return %c0_i32, %c0_i32_0 : i32, i32
  }
  func.func @transform_7(%arg0: i32) -> (i32, i32) {
    %c0_i32 = arith.constant 0 : i32
    %c0_i32_0 = arith.constant 0 : i32
    %c0_i32_1 = arith.constant 0 : i32
    return %c0_i32, %c0_i32_0 : i32, i32
  }
  func.func @transform_8(%arg0: i32) -> (i32, i32) {
    %c0_i32 = arith.constant 0 : i32
    %c0_i32_0 = arith.constant 0 : i32
    %c0_i32_1 = arith.constant 0 : i32
    return %c0_i32, %c0_i32_0 : i32, i32
  }
  func.func @transform_9(%arg0: i32) -> (i32, i32) {
    %c0_i32 = arith.constant 0 : i32
    %c0_i32_0 = arith.constant 0 : i32
    return %arg0, %c0_i32 : i32, i32
  }
}

</mosaic_0001>

<bundles_post_ra>
// kernel: tpu_custom_call.1
= control target key start
LH: loop header
LB: loop body
LE: loop exit
PB: predicated region body
PF: predicated region fallthrough
CT: control target
= control target key end

     0   :  { %14 = vsyncpa [#allocation3], 0  ;;  %s1101_s0 = inlined_call_operand.hbm [shape: f32[16,128], index: 0, kind: input, shape index: {}]   ;;  %s1102_s1 = inlined_call_operand.hbm [shape: bf16[128,128], index: 1, kind: input, shape index: {}]   ;;  %s1103_s2 = inlined_call_operand.vmem [shape: f32[1,128], index: 2, kind: input, shape index: {}]   ;;  %s1104_s3 = inlined_call_operand.hbm [shape: bf16[128,128], index: 3, kind: input, shape index: {}]   ;;  %s1105_s4 = inlined_call_operand.vmem [shape: f32[1,128], index: 4, kind: input, shape index: {}]   ;;  %s1106_s5 = inlined_call_operand.hbm [shape: bf16[128,128], index: 5, kind: input, shape index: {}]   ;;  %s1107_s6 = inlined_call_operand.vmem [shape: f32[1,128], index: 6, kind: input, shape index: {}]   ;;  %s1108_s7 = inlined_call_operand.hbm [shape: bf16[128,128], index: 7, kind: input, shape index: {}]   ;;  %s1109_s8 = inlined_call_operand.vmem [shape: f32[1,128], index: 8, kind: input, shape index: {}]   ;;  %s1110_s9 = inlined_call_operand.hbm [shape: f32[16,128], index: 9, kind: output, shape index: {}]  }
   0x1   :  { %15 = vsyncpa [#allocation6], 0 }
   0x2   :  { %16 = vsyncpa [#allocation9], 0 }
   0x3   :  { %17 = vsyncpa [#allocation4], 0  ;;  %s947_s30 = smov [#allocation5]  }
   0x4   :  { %s35_s10 = sshll.u32 %s947_s30, 4  ;;  %s36_s10 = int_to_ptr.vmem [resolvable:$true] %s35_s10 }
   0x5   :  { %s827_s11 = scalar_lea.vmem %s36_s10, 1024  ;;  %p832_p1 = scmp.lt.s32.totalorder %s36_s10, %s36_s10 }
   0x6   :  { %p828_p0 = scmp.ne.s32.totalorder %s36_s10, %s827_s11  ;;  %p833_p2 = scmp.lt.s32.totalorder %s827_s11, %s827_s11 }
   0x8   :  { %p834_p3 = por %p833_p2, %p832_p1 }
   0xa   :  { %p835_p4 = pnand %p834_p3, %p828_p0 }
   0xc   :  { %838 = shalt.err (!%p835_p4)
}
   0xd   :  { %s948_s12 = smov 64   ;;  %s949_s13 = smov 4  }
   0xe   :  { %41 = dma.hbm_to_vmem [thread:$0]  %s1102_s1, 1024, %s36_s10, [#allocation6], %s948_s12, %s948_s12, %s949_s13  }
   0xf   :  { %s950_s16 = smov [#allocation8]   ;;  %s951_s18 = smov [#allocation2]  }
  0x10   :  { %s63_s17 = sshll.u32 %s950_s16, 4  ;;  %s23_s19 = sshll.u32 %s951_s18, 4  ;;  %s64_s17 = int_to_ptr.vmem [resolvable:$true] %s63_s17  ;;  %s24_s19 = int_to_ptr.vmem [resolvable:$true] %s23_s19 }
  0x11   :  { %s847_s20 = scalar_lea.vmem %s64_s17, 1024  ;;  %p852_p6 = scmp.lt.s32.totalorder %s64_s17, %s64_s17 }
  0x12   :  { %p848_p5 = scmp.ne.s32.totalorder %s64_s17, %s847_s20  ;;  %p853_p7 = scmp.lt.s32.totalorder %s847_s20, %s847_s20 }
  0x14   :  { %p854_p8 = por %p853_p7, %p852_p6 }
  0x16   :  { %p855_p9 = pnand %p854_p8, %p848_p5 }
  0x18   :  { %858 = shalt.err (!%p855_p9)
}
  0x19   :  { %69 = dma.hbm_to_vmem [thread:$0]  %s1106_s5, 1024, %s64_s17, [#allocation9], %s948_s12, %s948_s12, %s949_s13  }
  0x1a   :  { %s867_s1 = scalar_lea.vmem %s24_s19, 256  ;;  %p872_p11 = scmp.lt.s32.totalorder %s24_s19, %s24_s19 }
  0x1b   :  { %p868_p10 = scmp.ne.s32.totalorder %s24_s19, %s867_s1  ;;  %p873_p12 = scmp.lt.s32.totalorder %s867_s1, %s867_s1 }
  0x1d   :  { %p874_p13 = por %p873_p12, %p872_p11 }
  0x1f   :  { %p875_p0 = pnand %p874_p13, %p868_p10 }
  0x21   :  { %878 = shalt.err (!%p875_p0)
}
  0x22   :  { %s952_s23 = smov 128   ;;  %s953_s24 = smov 8  }
  0x23   :  { %29 = dma.hbm_to_vmem [thread:$0]  %s1101_s0, 256, %s24_s19, [#allocation3], %s952_s23, %s952_s23, %s953_s24  }
  0x24   :  { %s954_s27 = smov [#allocation7]   ;;  %s955_s5 = smov [#allocation10]  }
  0x25   :  { %s49_s28 = sshll.u32 %s954_s27, 4  ;;  %s77_s29 = sshll.u32 %s955_s5, 4  ;;  %s50_s28 = int_to_ptr.vmem [resolvable:$true] %s49_s28  ;;  %s78_s29 = int_to_ptr.vmem [resolvable:$true] %s77_s29 }
  0x26   :  { %s887_s30 = scalar_lea.vmem %s50_s28, 1024  ;;  %p892_p2 = scmp.lt.s32.totalorder %s50_s28, %s50_s28 }
  0x27   :  { %p888_p1 = scmp.ne.s32.totalorder %s50_s28, %s887_s30  ;;  %p893_p3 = scmp.lt.s32.totalorder %s887_s30, %s887_s30 }
  0x29   :  { %p894_p4 = por %p893_p3, %p892_p2 }
  0x2b   :  { %p895_p5 = pnand %p894_p4, %p888_p1 }
  0x2d   :  { %898 = shalt.err (!%p895_p5)
}
  0x2e   :  { %55 = dma.hbm_to_vmem [thread:$0]  %s1104_s3, 1024, %s50_s28, [#allocation6], %s948_s12, %s948_s12, %s949_s13  }
  0x2f   :  { %s907_s0 = scalar_lea.vmem %s78_s29, 1024  ;;  %p912_p7 = scmp.lt.s32.totalorder %s78_s29, %s78_s29 }
  0x30   :  { %p908_p6 = scmp.ne.s32.totalorder %s78_s29, %s907_s0  ;;  %p913_p8 = scmp.lt.s32.totalorder %s907_s0, %s907_s0 }
  0x32   :  { %p914_p9 = por %p913_p8, %p912_p7 }
  0x34   :  { %p915_p10 = pnand %p914_p9, %p908_p6 }
  0x36   :  { %918 = shalt.err (!%p915_p10)
}
  0x37   :  { %83 = dma.hbm_to_vmem [thread:$0]  %s1108_s7, 1024, %s78_s29, [#allocation9], %s948_s12, %s948_s12, %s949_s13  }
  0x38   :  { %939 = dma.done.wait [#allocation3], 256  }
  0x39   :  { %940 = vsyncadd [#allocation3], 4294967040 }
  0x3a   :  { %941 = dma.done.wait [#allocation6], 2048  }
  0x3b   :  { %942 = vsyncadd [#allocation6], 4294965248 }
  0x3c   :  { %943 = dma.done.wait [#allocation9], 2048  }
  0x3d   :  { %944 = vsyncadd [#allocation9], 4294965248  ;;  %v956_v0 = vmov 0.0   ;;  %vm957_vm0 = vmmov 0   ;;  %v779_v1 = vld [vmem:[#allocation5 + $0x38] sm:$0xff]   ;;  %v780_v2 = vld [vmem:[#allocation5 + $0x30] sm:$0xff]  }
  0x3e   :  { %687 = vmatprep.subr.bf16.mxu0 %v956_v0  ;;  %703 = vmatprep.mubr.msk.bf16.mxu0 %vm957_vm0, %v956_v0  ;;  %v781_v3 = vld [vmem:[#allocation5 + $0x28] sm:$0xff]   ;;  %v782_v4 = vld [vmem:[#allocation5 + $0x20] sm:$0xff]   ;;  %v783_v5 = vld [vmem:[#allocation5 + $0x18] sm:$0xff]   ;;  %s958_s17 = smov [#allocation11]  }
  0x3f   :  { %707 = vmatprep.subr.bf16.mxu1 %v956_v0  ;;  %723 = vmatprep.mubr.msk.bf16.mxu1 %vm957_vm0, %v956_v0  ;;  %v784_v6 = vld [vmem:[#allocation5 + $0x10] sm:$0xff]   ;;  %v785_v7 = vld [vmem:[#allocation5 + $0x8] sm:$0xff]   ;;  %v786_v8 = vld [vmem:[#allocation5] sm:$0xff]   ;;  %s601_s18 = sshll.u32 %s958_s17, 4  ;;  %s602_s18 = int_to_ptr.vmem [resolvable:$true] %s601_s18 }
  0x40   :  { %688 = vmatpush3.bf16.msra.mxu0 %v779_v1  ;;  %v102_v9 = vld [vmem:[#allocation2] sm:$0xff]  ;;  %v103_v10 = vld [vmem:[#allocation2 + $0x8] sm:$0xff]  ;;  %v789_v14 = vld [vmem:[#allocation7 + $0x28] sm:$0xff]   ;;  %s919_s19 = scalar_lea.vmem %s602_s18, 256  ;;  %p924_p12 = scmp.lt.s32.totalorder %s602_s18, %s602_s18 }
  0x41   :  { %689 = vmatprep.subr.bf16.mxu0 %v956_v0  ;;  %v104_v11 = vpack.c.bf16 %v103_v10, %v102_v9  ;;  %v787_v12 = vld [vmem:[#allocation7 + $0x38] sm:$0xff]   ;;  %v788_v13 = vld [vmem:[#allocation7 + $0x30] sm:$0xff]   ;;  %v790_v15 = vld [vmem:[#allocation7 + $0x20] sm:$0xff]   ;;  %p920_p11 = scmp.ne.s32.totalorder %s602_s18, %s919_s19  ;;  %p925_p13 = scmp.lt.s32.totalorder %s919_s19, %s919_s19 }
  0x42   :  { %708 = vmatpush3.bf16.msra.mxu1 %v787_v12  ;;  %v791_v16 = vld [vmem:[#allocation7 + $0x18] sm:$0xff]   ;;  %v792_v17 = vld [vmem:[#allocation7 + $0x10] sm:$0xff]   ;;  %v793_v18 = vld [vmem:[#allocation7 + $0x8] sm:$0xff]  }
  0x43   :  { %709 = vmatprep.subr.bf16.mxu1 %v956_v0  ;;  %v794_v19 = vld [vmem:[#allocation7] sm:$0xff]   ;;  %v795_v20 = vld [vmem:[#allocation8 + $0x38] sm:$0xff]   ;;  %v796_v21 = vld [vmem:[#allocation8 + $0x30] sm:$0xff]   ;;  %p926_p0 = por %p925_p13, %p924_p12 }
  0x44   :  { %690 = vmatpush3.bf16.msra.mxu0 %v780_v2  ;;  %v797_v22 = vld [vmem:[#allocation8 + $0x28] sm:$0xff]   ;;  %v798_v23 = vld [vmem:[#allocation8 + $0x20] sm:$0xff]   ;;  %v799_v24 = vld [vmem:[#allocation8 + $0x18] sm:$0xff]  }
  0x45   :  { %691 = vmatprep.subr.bf16.mxu0 %v956_v0  ;;  %v800_v25 = vld [vmem:[#allocation8 + $0x10] sm:$0xff]   ;;  %v801_v52 = vld [vmem:[#allocation8 + $0x8] sm:$0xff]   ;;  %v802_v53 = vld [vmem:[#allocation8] sm:$0xff]   ;;  %p927_p1 = pnand %p926_p0, %p920_p11 }
  0x46   :  { %710 = vmatpush3.bf16.msra.mxu1 %v788_v13  ;;  %v615_v26 = vld [vmem:[%s1103_s2] ss:$0 sm:$0xff]  ;;  %v803_v62 = vld [vmem:[#allocation10 + $0x38] sm:$0xff]   ;;  %v805_v1 = vld [vmem:[#allocation10 + $0x28] sm:$0xff]  }
  0x47   :  { %711 = vmatprep.subr.bf16.mxu1 %v956_v0  ;;  %v624_v55 = vld [vmem:[%s1105_s4] ss:$0 sm:$0xff]  ;;  %v806_v2 = vld [vmem:[#allocation10 + $0x20] sm:$0xff]  }
  0x48   :  { %692 = vmatpush3.bf16.msra.mxu0 %v781_v3  ;;  %v804_v63 = vld [vmem:[#allocation10 + $0x30] sm:$0xff]   ;;  %v807_v3 = vld [vmem:[#allocation10 + $0x18] sm:$0xff]  }
  0x49   :  { %693 = vmatprep.subr.bf16.mxu0 %v956_v0 }
  0x4a   :  { %712 = vmatpush3.bf16.msra.mxu1 %v789_v14 }
  0x4b   :  { %713 = vmatprep.subr.bf16.mxu1 %v956_v0 }
  0x4c   :  { %694 = vmatpush3.bf16.msra.mxu0 %v782_v4  ;;  %v808_v4 = vld [vmem:[#allocation10 + $0x10] sm:$0xff]  }
  0x4d   :  { %695 = vmatprep.subr.bf16.mxu0 %v956_v0 }
  0x4e   :  { %714 = vmatpush3.bf16.msra.mxu1 %v790_v15 }
  0x4f   :  { %715 = vmatprep.subr.bf16.mxu1 %v956_v0 }
  0x50   :  { %696 = vmatpush3.bf16.msra.mxu0 %v783_v5  ;;  %v809_v5 = vld [vmem:[#allocation10 + $0x8] sm:$0xff]  }
  0x51   :  { %697 = vmatprep.subr.bf16.mxu0 %v956_v0 }
  0x52   :  { %716 = vmatpush3.bf16.msra.mxu1 %v791_v16 }
  0x53   :  { %717 = vmatprep.subr.bf16.mxu1 %v956_v0 }
  0x54   :  { %698 = vmatpush3.bf16.msra.mxu0 %v784_v6  ;;  %v810_v6 = vld [vmem:[#allocation10] sm:$0xff]  }
  0x55   :  { %699 = vmatprep.subr.bf16.mxu0 %v956_v0 }
  0x56   :  { %718 = vmatpush3.bf16.msra.mxu1 %v792_v17 }
  0x57   :  { %719 = vmatprep.subr.bf16.mxu1 %v956_v0 }
  0x58   :  { %700 = vmatpush3.bf16.msra.mxu0 %v785_v7  ;;  %v633_v7 = vld [vmem:[%s1107_s6] ss:$0 sm:$0xff] }
  0x59   :  { %701 = vmatprep.subr.bf16.mxu0 %v956_v0 }
  0x5a   :  { %720 = vmatpush3.bf16.msra.mxu1 %v793_v18 }
  0x5b   :  { %721 = vmatprep.subr.bf16.mxu1 %v956_v0 }
  0x5c   :  { %702 = vmatpush3.bf16.msra.mxu0 %v786_v8 }
  0x5d   :  { %727 = vmatprep.subr.bf16.mxu0 %v956_v0 }
  0x5e   :  { %722 = vmatpush3.bf16.msra.mxu1 %v794_v19 }
  0x5f   :  { %704 = vmatmul.mubr.bf16.vlgmr.msra.gmra.mxu0 %v104_v11  ;;  %747 = vmatprep.subr.bf16.mxu1 %v956_v0 }
  0x60   :  { %743 = vmatprep.mubr.msk.bf16.mxu0 %vm957_vm0, %v956_v0  ;;  %728 = vmatpush3.bf16.msra.mxu0 %v795_v20 }
  0x61   :  { %729 = vmatprep.subr.bf16.mxu0 %v956_v0 }
  0x64   :  { %730 = vmatpush3.bf16.msra.mxu0 %v796_v21 }
  0x65   :  { %731 = vmatprep.subr.bf16.mxu0 %v956_v0 }
  0x68   :  { %732 = vmatpush3.bf16.msra.mxu0 %v797_v22 }
  0x69   :  { %733 = vmatprep.subr.bf16.mxu0 %v956_v0 }
  0x6c   :  { %734 = vmatpush3.bf16.msra.mxu0 %v798_v23 }
  0x6d   :  { %735 = vmatprep.subr.bf16.mxu0 %v956_v0 }
  0x70   :  { %736 = vmatpush3.bf16.msra.mxu0 %v799_v24 }
  0x71   :  { %737 = vmatprep.subr.bf16.mxu0 %v956_v0 }
  0x74   :  { %738 = vmatpush3.bf16.msra.mxu0 %v800_v25 }
  0x75   :  { %739 = vmatprep.subr.bf16.mxu0 %v956_v0 }
  0x78   :  { %740 = vmatpush3.bf16.msra.mxu0 %v801_v52 }
  0x79   :  { %741 = vmatprep.subr.bf16.mxu0 %v956_v0 }
  0x7c   :  { %742 = vmatpush3.bf16.msra.mxu0 %v802_v53 }
 0x11f   :  { %v210_v27 = vpop.f32.mrf.mxu0 }
 0x120   :  { %v211_v28 = vadd.f32 %v615_v26, %v210_v27 }
 0x121   :  { %v705_v29 = vpop.f32.mrf.mxu0 }
 0x122   :  { %v219_v30 = vmul.f32 %v211_v28, %v211_v28  ;;  %v217_v46 = vmul.f32 0.5, %v211_v28 }
 0x123   :  { %v213_v31 = vpop.f32.mrf.mxu0 }
 0x124   :  { %v221_v32 = vmul.f32 %v219_v30, %v211_v28  ;;  %v214_v33 = vadd.f32 %v615_v26, %v213_v31 }
 0x125   :  { %v706_v34 = vpop.f32.mrf.mxu0 }
 0x126   :  { %v223_v35 = vmul.f32 0.044715, %v221_v32  ;;  %v220_v36 = vmul.f32 %v214_v33, %v214_v33  ;;  %v218_v47 = vmul.f32 0.5, %v214_v33  ;;  %v642_v32 = vld [vmem:[%s1109_s8] ss:$0 sm:$0xff] }
 0x128   :  { %v225_v37 = vadd.f32 %v223_v35, %v211_v28  ;;  %v222_v38 = vmul.f32 %v220_v36, %v214_v33 }
 0x12a   :  { %v227_v39 = vmul.f32 0.7978846, %v225_v37  ;;  %v224_v40 = vmul.f32 0.044715, %v222_v38 }
 0x12c   :  { %811 = vtanh.f32 %v227_v39  ;;  %v226_v41 = vadd.f32 %v224_v40, %v214_v33 }
 0x12e   :  { %v228_v42 = vmul.f32 0.7978846, %v226_v41 }
 0x130   :  { %813 = vtanh.f32 %v228_v42 }
 0x139   :  { %v812_v43 = vpop.eup %811 }
 0x13a   :  { %v231_v44 = vadd.f32 1.0, %v812_v43 }
 0x13c   :  { %v233_v49 = vmul.f32 %v231_v44, %v217_v46 }
 0x13d   :  { %v814_v45 = vpop.eup %813 }
 0x13e   :  { %v232_v48 = vadd.f32 1.0, %v814_v45 }
 0x140   :  { %v234_v50 = vmul.f32 %v232_v48, %v218_v47 }
 0x142   :  { %v235_v51 = vpack.c.bf16 %v234_v50, %v233_v49 }
 0x144   :  { %724 = vmatmul.mubr.bf16.vlgmr.msra.gmra.mxu1 %v235_v51 }
 0x145   :  { %763 = vmatprep.mubr.msk.bf16.mxu1 %vm957_vm0, %v956_v0  ;;  %748 = vmatpush3.bf16.msra.mxu1 %v803_v62 }
 0x146   :  { %749 = vmatprep.subr.bf16.mxu1 %v956_v0 }
 0x149   :  { %750 = vmatpush3.bf16.msra.mxu1 %v804_v63 }
 0x14a   :  { %751 = vmatprep.subr.bf16.mxu1 %v956_v0 }
 0x14d   :  { %752 = vmatpush3.bf16.msra.mxu1 %v805_v1 }
 0x14e   :  { %753 = vmatprep.subr.bf16.mxu1 %v956_v0 }
 0x151   :  { %754 = vmatpush3.bf16.msra.mxu1 %v806_v2 }
 0x152   :  { %755 = vmatprep.subr.bf16.mxu1 %v956_v0 }
 0x155   :  { %756 = vmatpush3.bf16.msra.mxu1 %v807_v3 }
 0x156   :  { %757 = vmatprep.subr.bf16.mxu1 %v956_v0 }
 0x159   :  { %758 = vmatpush3.bf16.msra.mxu1 %v808_v4 }
 0x15a   :  { %759 = vmatprep.subr.bf16.mxu1 %v956_v0 }
 0x15d   :  { %760 = vmatpush3.bf16.msra.mxu1 %v809_v5 }
 0x15e   :  { %761 = vmatprep.subr.bf16.mxu1 %v956_v0 }
 0x161   :  { %762 = vmatpush3.bf16.msra.mxu1 %v810_v6 }
 0x204   :  { %v341_v54 = vpop.f32.mrf.mxu1 }
 0x205   :  { %v342_v58 = vadd.f32 %v624_v55, %v341_v54 }
 0x206   :  { %v725_v56 = vpop.f32.mrf.mxu1 }
 0x208   :  { %v344_v57 = vpop.f32.mrf.mxu1 }
 0x209   :  { %v1078_v59 = vadd.f32 %v624_v55, %v344_v57 }
 0x20a   :  { %v726_v60 = vpop.f32.mrf.mxu1 }
 0x20b   :  { %v348_v61 = vpack.c.bf16 %v1078_v59, %v342_v58 }
 0x20d   :  { %744 = vmatmul.mubr.bf16.vlgmr.msra.gmra.mxu0 %v348_v61 }
 0x2cd   :  { %v454_v8 = vpop.f32.mrf.mxu0 }
 0x2ce   :  { %v455_v9 = vadd.f32 %v633_v7, %v454_v8 }
 0x2cf   :  { %v745_v10 = vpop.f32.mrf.mxu0 }
 0x2d0   :  { %v463_v11 = vmul.f32 %v455_v9, %v455_v9  ;;  %v461_v26 = vmul.f32 0.5, %v455_v9 }
 0x2d1   :  { %v457_v12 = vpop.f32.mrf.mxu0 }
 0x2d2   :  { %v465_v13 = vmul.f32 %v463_v11, %v455_v9  ;;  %v458_v14 = vadd.f32 %v633_v7, %v457_v12 }
 0x2d3   :  { %v746_v15 = vpop.f32.mrf.mxu0 }
 0x2d4   :  { %v467_v16 = vmul.f32 0.044715, %v465_v13  ;;  %v464_v17 = vmul.f32 %v458_v14, %v458_v14  ;;  %v462_v27 = vmul.f32 0.5, %v458_v14 }
 0x2d6   :  { %v469_v18 = vadd.f32 %v467_v16, %v455_v9  ;;  %v466_v19 = vmul.f32 %v464_v17, %v458_v14 }
 0x2d8   :  { %v471_v20 = vmul.f32 0.7978846, %v469_v18  ;;  %v468_v21 = vmul.f32 0.044715, %v466_v19 }
 0x2da   :  { %815 = vtanh.f32 %v471_v20  ;;  %v470_v0 = vadd.f32 %v468_v21, %v458_v14 }
 0x2dc   :  { %v472_v22 = vmul.f32 0.7978846, %v470_v0 }
 0x2de   :  { %817 = vtanh.f32 %v472_v22 }
 0x2e7   :  { %v816_v23 = vpop.eup %815 }
 0x2e8   :  { %v475_v24 = vadd.f32 1.0, %v816_v23 }
 0x2ea   :  { %v477_v29 = vmul.f32 %v475_v24, %v461_v26 }
 0x2eb   :  { %v818_v25 = vpop.eup %817 }
 0x2ec   :  { %v476_v28 = vadd.f32 1.0, %v818_v25 }
 0x2ee   :  { %v478_v30 = vmul.f32 %v476_v28, %v462_v27 }
 0x2f0   :  { %v479_v31 = vpack.c.bf16 %v478_v30, %v477_v29 }
 0x2f2   :  { %764 = vmatmul.mubr.bf16.vlgmr.msra.gmra.mxu1 %v479_v31 }
 0x3b2   :  { %v585_v33 = vpop.f32.mrf.mxu1 }
 0x3b3   :  { %v586_v34 = vadd.f32 %v642_v32, %v585_v33 }
 0x3b4   :  { %v765_v35 = vpop.f32.mrf.mxu1 }
 0x3b5   :  { %v592_v36 = vadd.f32 %v586_v34, %v342_v58 }
 0x3b6   :  { %v588_v37 = vpop.f32.mrf.mxu1 }
 0x3b7   :  { %594 = vst [vmem:[#allocation11] sm:$0xff] %v592_v36  ;;  %v589_v38 = vadd.f32 %v642_v32, %v588_v37 }
 0x3b8   :  { %v766_v39 = vpop.f32.mrf.mxu1 }
 0x3b9   :  { %v593_v40 = vadd.f32 %v589_v38, %v1078_v59 }
 0x3bb   :  { %595 = vst [vmem:[#allocation11 + $0x8] sm:$0xff] %v593_v40 }
 0x3bc   :  { %930 = shalt.err (!%p927_p1)
}
 0x3bd   :  { %607 = dma.vmem_to_hbm [thread:$0]  %s602_s18, 256, %s1110_s9, [#allocation4], %s952_s23, %s952_s23, %s953_s24  }
 0x3be   :  { %945 = dma.done.wait [#allocation4], 256  }
 0x3bf   :  { %946 = vsyncadd [#allocation4], 4294967040 }
 0x3c0   :  { %611 = vsyncpa [#allocation3], 1 }
 0x3c1   :  { %612 = vsyncpa [#allocation6], 1 }
 0x3c2   :  { %613 = vsyncpa [#allocation9], 1 }
 0x3c3   :  { %614 = vsyncpa [#allocation4], 1 }

</bundles_post_ra>
